<compile_context>
chip_gen: v5e
topology: v5e:2x2
jax: 0.10.0
libtpu: 0.0.40
codegen_flags: <defaults>
</compile_context>

<pallas_src>
import functools

import jax
import jax.numpy as jnp
from jax import lax
from jax.experimental import pallas as pl
from jax.experimental.pallas import tpu as pltpu


def mha_kernel(q_ref, k_ref, v_ref,
               wq_ref, bq_ref, wk_ref, bk_ref, wv_ref, bv_ref,
               wo_ref, bo_ref,
               out_ref, attn_ref, acc_ref, *, op_dtype):
    h = pl.program_id(1)
    last_h = pl.num_programs(1) - 1

    q = q_ref[0].astype(op_dtype)             # (S, H)
    k = k_ref[0].astype(op_dtype)
    v = v_ref[0].astype(op_dtype)

    wq = wq_ref[0]                             # (H, hd)  (scale folded in)
    wk = wk_ref[0]
    wv = wv_ref[0]
    wo = wo_ref[0]                             # (hd, H)

    # Per-head Q/K/V projections (MXU), f32 accumulation, f32 bias add.
    Qh = jnp.dot(q, wq, preferred_element_type=jnp.float32) + bq_ref[0]   # (S, hd)
    Kh = jnp.dot(k, wk, preferred_element_type=jnp.float32) + bk_ref[0]
    Vh = jnp.dot(v, wv, preferred_element_type=jnp.float32) + bv_ref[0]

    # energy = (Q * scale) @ K^T  — scale already folded into wq/bq on the host.
    energy = lax.dot_general(Qh.astype(op_dtype), Kh.astype(op_dtype),
                             dimension_numbers=(((1,), (1,)), ((), ())),
                             preferred_element_type=jnp.float32)          # (S, S)
    # TODO(synk): mask is None in this forward configuration; a masked_fill
    # (jnp.where(mask == 0, -1e9, energy)) would slot in here if a mask existed.

    # Numerically stable softmax, kept in f32 on every chip generation.
    m = jnp.max(energy, axis=-1, keepdims=True)
    e = jnp.exp(energy - m)
    attn = e * pl.reciprocal(jnp.sum(e, axis=-1, keepdims=True), approx=True)
    attn_ref[0, 0] = attn.astype(attn_ref.dtype)

    # TODO(synk): nn.Dropout treated as identity (eval / inference mode).

    ctx = jnp.dot(attn.astype(op_dtype), Vh.astype(op_dtype),
                  preferred_element_type=jnp.float32)                     # (S, hd)

    # This head's contribution to the output projection: ctx @ wo[h*hd:(h+1)*hd, :]
    contrib = jnp.dot(ctx.astype(op_dtype), wo,
                      preferred_element_type=jnp.float32)                 # (S, H)

    @pl.when(h == 0)
    def _():
        acc_ref[...] = jnp.zeros_like(acc_ref)

    acc_ref[...] += contrib

    @pl.when(h == last_h)
    def _():
        out_ref[0] = (acc_ref[...] + bo_ref[...]).astype(out_ref.dtype)


def multi_head_attention(q, k, v, params, *, n_heads, mxu_dtype=jnp.bfloat16):
    B, S, H = q.shape
    assert H % n_heads == 0
    hd = H // n_heads
    scale = float(hd) ** (-0.5)

    wq, bq, wk, bk, wv, bv, wo, bo = params
    op_dtype = q.dtype if mxu_dtype is None else mxu_dtype

    # One-time host-side re-layout of the (small) weights so the kernel gets
    # contiguous per-head slices straight from BlockSpec. Also halves weight
    # HBM->VMEM traffic when op_dtype is bf16.
    def split_cols(w):  # (H, H) -> (n_heads, H, hd): output features per head
        return jnp.transpose(w.reshape(H, n_heads, hd), (1, 0, 2))

    wqh = split_cols(wq * scale).astype(op_dtype)
    wkh = split_cols(wk).astype(op_dtype)
    wvh = split_cols(wv).astype(op_dtype)
    woh = wo.reshape(n_heads, hd, H).astype(op_dtype)   # input features per head
    bqh = (bq * scale).reshape(n_heads, 1, hd).astype(jnp.float32)
    bkh = bk.reshape(n_heads, 1, hd).astype(jnp.float32)
    bvh = bv.reshape(n_heads, 1, hd).astype(jnp.float32)
    bo2 = bo.reshape(1, H).astype(jnp.float32)

    kernel = functools.partial(mha_kernel, op_dtype=op_dtype)

    act_spec   = pl.BlockSpec((1, S, H),  lambda b, h: (b, 0, 0))
    w_in_spec  = pl.BlockSpec((1, H, hd), lambda b, h: (h, 0, 0))
    b_in_spec  = pl.BlockSpec((1, 1, hd), lambda b, h: (h, 0, 0))
    w_out_spec = pl.BlockSpec((1, hd, H), lambda b, h: (h, 0, 0))
    b_out_spec = pl.BlockSpec((1, H),     lambda b, h: (0, 0))

    out_shapes = (
        jax.ShapeDtypeStruct((B, S, H), q.dtype),
        jax.ShapeDtypeStruct((B, n_heads, S, S), jnp.float32),
    )
    out_specs = (
        pl.BlockSpec((1, S, H), lambda b, h: (b, 0, 0)),        # out (resident over h)
        pl.BlockSpec((1, 1, S, S), lambda b, h: (b, h, 0, 0)),  # per-head attention
    )

    return pl.pallas_call(
        kernel,
        out_shape=out_shapes,
        grid_spec=pltpu.PrefetchScalarGridSpec(
            num_scalar_prefetch=0,
            grid=(B, n_heads),
            in_specs=[act_spec, act_spec, act_spec,
                      w_in_spec, b_in_spec,
                      w_in_spec, b_in_spec,
                      w_in_spec, b_in_spec,
                      w_out_spec, b_out_spec],
            out_specs=out_specs,
            scratch_shapes=[pltpu.VMEM((S, H), jnp.float32)],
        ),
        compiler_params=pltpu.CompilerParams(
            dimension_semantics=("parallel", "arbitrary")),
    )(q, k, v, wqh, bqh, wkh, bkh, wvh, bvh, woh, bo2)


def _ref_forward(q, k, v, params, *, n_heads):
    """Pure-JAX f32 reference mirroring the PyTorch forward (dropout = identity)."""
    B, S, H = q.shape
    hd = H // n_heads
    scale = float(hd) ** (-0.5)
    wq, bq, wk, bk, wv, bv, wo, bo = params
    Q = q @ wq + bq
    K = k @ wk + bk
    V = v @ wv + bv

    def split(x):
        return jnp.transpose(x.reshape(B, S, n_heads, hd), (0, 2, 1, 3))

    Qh, Kh, Vh = split(Q), split(K), split(V)
    energy = jnp.einsum('bhqd,bhkd->bhqk', Qh, Kh) * scale
    attn = jax.nn.softmax(energy, axis=-1)
    x = jnp.einsum('bhqk,bhkd->bhqd', attn, Vh)
    x = jnp.transpose(x, (0, 2, 1, 3)).reshape(B, S, H)
    return x @ wo + bo, attn


if __name__ == "__main__":
    B, S, H, n_heads = 2, 8, 32, 4

    key = jax.random.PRNGKey(0)
    ks = jax.random.split(key, 11)
    scale_w = 1.0 / jnp.sqrt(H)

    # Deterministic synthetic parameters (shapes from nn.Linear(H, H, bias=True)),
    # stored pre-transposed as [H_in, H_out].
    wq = jax.random.uniform(ks[0], (H, H), jnp.float32, -scale_w, scale_w)
    bq = jax.random.uniform(ks[1], (H,), jnp.float32, -scale_w, scale_w)
    wk = jax.random.uniform(ks[2], (H, H), jnp.float32, -scale_w, scale_w)
    bk = jax.random.uniform(ks[3], (H,), jnp.float32, -scale_w, scale_w)
    wv = jax.random.uniform(ks[4], (H, H), jnp.float32, -scale_w, scale_w)
    bv = jax.random.uniform(ks[5], (H,), jnp.float32, -scale_w, scale_w)
    wo = jax.random.uniform(ks[6], (H, H), jnp.float32, -scale_w, scale_w)
    bo = jax.random.uniform(ks[7], (H,), jnp.float32, -scale_w, scale_w)
    params = (wq, bq, wk, bk, wv, bv, wo, bo)

    q = jax.random.normal(ks[8], (B, S, H), jnp.float32)
    k = jax.random.normal(ks[9], (B, S, H), jnp.float32)
    v = jax.random.normal(ks[10], (B, S, H), jnp.float32)

    out, attn = multi_head_attention(q, k, v, params, n_heads=n_heads)
    out = jax.block_until_ready(out)
    attn = jax.block_until_ready(attn)

    ref_out, ref_attn = _ref_forward(q, k, v, params, n_heads=n_heads)
    # bf16 MXU operands (f32 accumulation) + approx reciprocal loosen tolerances
    # vs the pure-f32 reference; observed errors at these shapes are ~1e-3.
    assert out.shape == (B, S, H) and attn.shape == (B, n_heads, S, S)
    assert jnp.allclose(out, ref_out, atol=5e-2, rtol=5e-2), \
        float(jnp.max(jnp.abs(out - ref_out)))
    assert jnp.allclose(attn, ref_attn, atol=2e-2, rtol=2e-2), \
        float(jnp.max(jnp.abs(attn - ref_attn)))

    print("KERNEL_OK")
</pallas_src>

<mosaic_0001>
module attributes {stable_mosaic.version = 11 : i64} {
  func.func @mha_kernel(%arg0: i32, %arg1: i32, %arg2: memref<1x8x32xf32, #tpu.memory_space<vmem>>, %arg3: memref<1x8x32xf32, #tpu.memory_space<vmem>>, %arg4: memref<1x8x32xf32, #tpu.memory_space<vmem>>, %arg5: memref<1x32x8xbf16, #tpu.memory_space<vmem>>, %arg6: memref<1x1x8xf32, #tpu.memory_space<vmem>>, %arg7: memref<1x32x8xbf16, #tpu.memory_space<vmem>>, %arg8: memref<1x1x8xf32, #tpu.memory_space<vmem>>, %arg9: memref<1x32x8xbf16, #tpu.memory_space<vmem>>, %arg10: memref<1x1x8xf32, #tpu.memory_space<vmem>>, %arg11: memref<1x8x32xbf16, #tpu.memory_space<vmem>>, %arg12: memref<1x32xf32, #tpu.memory_space<vmem>>, %arg13: memref<1x8x32xf32, #tpu.memory_space<vmem>>, %arg14: memref<1x1x8x8xf32, #tpu.memory_space<vmem>>, %arg15: memref<8x32xf32, #tpu.memory_space<vmem>>) attributes {dimension_semantics = [#tpu.dimension_semantics<parallel>, #tpu.dimension_semantics<arbitrary>], iteration_bounds = array<i64: 2, 4>, scalar_prefetch = 0 : i64, scratch_operands = 1 : i64, tpu.core_type = #tpu.core_type<tc>, window_params = [{transform_indices = @transform_0, window_bounds = array<i64: 1, 8, 32>}, {transform_indices = @transform_1, window_bounds = array<i64: 1, 8, 32>}, {transform_indices = @transform_2, window_bounds = array<i64: 1, 8, 32>}, {transform_indices = @transform_3, window_bounds = array<i64: 1, 32, 8>}, {transform_indices = @transform_4, window_bounds = array<i64: 1, 1, 8>}, {transform_indices = @transform_5, window_bounds = array<i64: 1, 32, 8>}, {transform_indices = @transform_6, window_bounds = array<i64: 1, 1, 8>}, {transform_indices = @transform_7, window_bounds = array<i64: 1, 32, 8>}, {transform_indices = @transform_8, window_bounds = array<i64: 1, 1, 8>}, {transform_indices = @transform_9, window_bounds = array<i64: 1, 8, 32>}, {pipeline_mode = #tpu.pipeline_mode<synchronous>, transform_indices = @transform_10, window_bounds = array<i64: 1, 32>}, {transform_indices = @transform_11, window_bounds = array<i64: 1, 8, 32>}, {transform_indices = @transform_12, window_bounds = array<i64: 1, 1, 8, 8>}]} {
    %c0 = arith.constant 0 : index
    %c0_0 = arith.constant 0 : index
    %c0_1 = arith.constant 0 : index
    %0 = vector.load %arg2[%c0, %c0_0, %c0_1] : memref<1x8x32xf32, #tpu.memory_space<vmem>>, vector<1x8x32xf32>
    %1 = vector.shape_cast %0 : vector<1x8x32xf32> to vector<8x32xf32>
    %2 = arith.truncf %1 : vector<8x32xf32> to vector<8x32xbf16>
    %c0_2 = arith.constant 0 : index
    %c0_3 = arith.constant 0 : index
    %c0_4 = arith.constant 0 : index
    %3 = vector.load %arg3[%c0_2, %c0_3, %c0_4] : memref<1x8x32xf32, #tpu.memory_space<vmem>>, vector<1x8x32xf32>
    %4 = vector.shape_cast %3 : vector<1x8x32xf32> to vector<8x32xf32>
    %5 = arith.truncf %4 : vector<8x32xf32> to vector<8x32xbf16>
    %c0_5 = arith.constant 0 : index
    %c0_6 = arith.constant 0 : index
    %c0_7 = arith.constant 0 : index
    %6 = vector.load %arg4[%c0_5, %c0_6, %c0_7] : memref<1x8x32xf32, #tpu.memory_space<vmem>>, vector<1x8x32xf32>
    %7 = vector.shape_cast %6 : vector<1x8x32xf32> to vector<8x32xf32>
    %8 = arith.truncf %7 : vector<8x32xf32> to vector<8x32xbf16>
    %c0_8 = arith.constant 0 : index
    %c0_9 = arith.constant 0 : index
    %c0_10 = arith.constant 0 : index
    %9 = vector.load %arg5[%c0_8, %c0_9, %c0_10] : memref<1x32x8xbf16, #tpu.memory_space<vmem>>, vector<1x32x8xbf16>
    %10 = vector.shape_cast %9 : vector<1x32x8xbf16> to vector<32x8xbf16>
    %c0_11 = arith.constant 0 : index
    %c0_12 = arith.constant 0 : index
    %c0_13 = arith.constant 0 : index
    %11 = vector.load %arg7[%c0_11, %c0_12, %c0_13] : memref<1x32x8xbf16, #tpu.memory_space<vmem>>, vector<1x32x8xbf16>
    %12 = vector.shape_cast %11 : vector<1x32x8xbf16> to vector<32x8xbf16>
    %c0_14 = arith.constant 0 : index
    %c0_15 = arith.constant 0 : index
    %c0_16 = arith.constant 0 : index
    %13 = vector.load %arg9[%c0_14, %c0_15, %c0_16] : memref<1x32x8xbf16, #tpu.memory_space<vmem>>, vector<1x32x8xbf16>
    %14 = vector.shape_cast %13 : vector<1x32x8xbf16> to vector<32x8xbf16>
    %c0_17 = arith.constant 0 : index
    %c0_18 = arith.constant 0 : index
    %c0_19 = arith.constant 0 : index
    %15 = vector.load %arg11[%c0_17, %c0_18, %c0_19] : memref<1x8x32xbf16, #tpu.memory_space<vmem>>, vector<1x8x32xbf16>
    %16 = vector.shape_cast %15 : vector<1x8x32xbf16> to vector<8x32xbf16>
    %cst = arith.constant dense<0.000000e+00> : vector<8x8xf32>
    %17 = tpu.matmul %2, %10, %cst {dimension_numbers = #tpu.dot_dimension_numbers<[1], [0], [0], [1], [0, 0, 1, 1], [], []>} : vector<8x32xbf16>, vector<32x8xbf16>, vector<8x8xf32> -> vector<8x8xf32>
    %c0_20 = arith.constant 0 : index
    %c0_21 = arith.constant 0 : index
    %c0_22 = arith.constant 0 : index
    %18 = vector.load %arg6[%c0_20, %c0_21, %c0_22] : memref<1x1x8xf32, #tpu.memory_space<vmem>>, vector<1x1x8xf32>
    %19 = vector.shape_cast %18 : vector<1x1x8xf32> to vector<1x8xf32>
    %20 = vector.broadcast %19 : vector<1x8xf32> to vector<8x8xf32>
    %21 = arith.addf %17, %20 : vector<8x8xf32>
    %cst_23 = arith.constant dense<0.000000e+00> : vector<8x8xf32>
    %22 = tpu.matmul %5, %12, %cst_23 {dimension_numbers = #tpu.dot_dimension_numbers<[1], [0], [0], [1], [0, 0, 1, 1], [], []>} : vector<8x32xbf16>, vector<32x8xbf16>, vector<8x8xf32> -> vector<8x8xf32>
    %c0_24 = arith.constant 0 : index
    %c0_25 = arith.constant 0 : index
    %c0_26 = arith.constant 0 : index
    %23 = vector.load %arg8[%c0_24, %c0_25, %c0_26] : memref<1x1x8xf32, #tpu.memory_space<vmem>>, vector<1x1x8xf32>
    %24 = vector.shape_cast %23 : vector<1x1x8xf32> to vector<1x8xf32>
    %25 = vector.broadcast %24 : vector<1x8xf32> to vector<8x8xf32>
    %26 = arith.addf %22, %25 : vector<8x8xf32>
    %cst_27 = arith.constant dense<0.000000e+00> : vector<8x8xf32>
    %27 = tpu.matmul %8, %14, %cst_27 {dimension_numbers = #tpu.dot_dimension_numbers<[1], [0], [0], [1], [0, 0, 1, 1], [], []>} : vector<8x32xbf16>, vector<32x8xbf16>, vector<8x8xf32> -> vector<8x8xf32>
    %c0_28 = arith.constant 0 : index
    %c0_29 = arith.constant 0 : index
    %c0_30 = arith.constant 0 : index
    %28 = vector.load %arg10[%c0_28, %c0_29, %c0_30] : memref<1x1x8xf32, #tpu.memory_space<vmem>>, vector<1x1x8xf32>
    %29 = vector.shape_cast %28 : vector<1x1x8xf32> to vector<1x8xf32>
    %30 = vector.broadcast %29 : vector<1x8xf32> to vector<8x8xf32>
    %31 = arith.addf %27, %30 : vector<8x8xf32>
    %32 = arith.truncf %21 : vector<8x8xf32> to vector<8x8xbf16>
    %33 = arith.truncf %26 : vector<8x8xf32> to vector<8x8xbf16>
    %cst_31 = arith.constant dense<0.000000e+00> : vector<8x8xf32>
    %34 = tpu.matmul %32, %33, %cst_31 {dimension_numbers = #tpu.dot_dimension_numbers<[1], [1], [0], [0], [0, 0, 1, 0], [], []>} : vector<8x8xbf16>, vector<8x8xbf16>, vector<8x8xf32> -> vector<8x8xf32>
    %cst_32 = arith.constant dense<0xFF800000> : vector<8xf32>
    %35 = vector.multi_reduction <maximumf>, %34, %cst_32 [1] : vector<8x8xf32> to vector<8xf32>
    %36 = vector.shape_cast %35 : vector<8xf32> to vector<8x1xf32>
    %37 = vector.broadcast %36 : vector<8x1xf32> to vector<8x8xf32>
    %38 = arith.subf %34, %37 : vector<8x8xf32>
    %39 = math.exp %38 : vector<8x8xf32>
    %cst_33 = arith.constant dense<0.000000e+00> : vector<8xf32>
    %40 = vector.multi_reduction <add>, %39, %cst_33 [1] : vector<8x8xf32> to vector<8xf32>
    %41 = vector.shape_cast %40 : vector<8xf32> to vector<8x1xf32>
    %42 = tpu.reciprocal %41 {approx = true} : vector<8x1xf32> -> vector<8x1xf32>
    %43 = vector.broadcast %42 : vector<8x1xf32> to vector<8x8xf32>
    %44 = arith.mulf %39, %43 : vector<8x8xf32>
    %c0_34 = arith.constant 0 : index
    %c0_35 = arith.constant 0 : index
    %c0_36 = arith.constant 0 : index
    %c0_37 = arith.constant 0 : index
    %45 = vector.load %arg14[%c0_34, %c0_35, %c0_36, %c0_37] : memref<1x1x8x8xf32, #tpu.memory_space<vmem>>, vector<1x1x8x8xf32>
    %46 = vector.shape_cast %45 : vector<1x1x8x8xf32> to vector<8x8xf32>
    %47 = vector.shape_cast %44 : vector<8x8xf32> to vector<1x1x8x8xf32>
    tpu.vector_store %arg14[%c0_34, %c0_35, %c0_36, %c0_37], %47 {strides = array<i32>} : memref<1x1x8x8xf32, #tpu.memory_space<vmem>>, vector<1x1x8x8xf32>,
    %48 = arith.truncf %44 : vector<8x8xf32> to vector<8x8xbf16>
    %49 = arith.truncf %31 : vector<8x8xf32> to vector<8x8xbf16>
    %cst_38 = arith.constant dense<0.000000e+00> : vector<8x8xf32>
    %50 = tpu.matmul %48, %49, %cst_38 {dimension_numbers = #tpu.dot_dimension_numbers<[1], [0], [0], [1], [0, 0, 1, 1], [], []>} : vector<8x8xbf16>, vector<8x8xbf16>, vector<8x8xf32> -> vector<8x8xf32>
    %51 = arith.truncf %50 : vector<8x8xf32> to vector<8x8xbf16>
    %cst_39 = arith.constant dense<0.000000e+00> : vector<8x32xf32>
    %52 = tpu.matmul %51, %16, %cst_39 {dimension_numbers = #tpu.dot_dimension_numbers<[1], [0], [0], [1], [0, 0, 1, 1], [], []>} : vector<8x8xbf16>, vector<8x32xbf16>, vector<8x32xf32> -> vector<8x32xf32>
    %c0_i32 = arith.constant 0 : i32
    %53 = arith.cmpi eq, %arg1, %c0_i32 : i32
    %54 = arith.extui %53 : i1 to i32
    %c0_i32_40 = arith.constant 0 : i32
    %55 = arith.cmpi ne, %54, %c0_i32_40 : i32
    scf.if %55 {
      %cst_46 = arith.constant 0.000000e+00 : f32
      %62 = vector.broadcast %cst_46 : f32 to vector<8x32xf32>
      %c0_47 = arith.constant 0 : index
      %c0_48 = arith.constant 0 : index
      %63 = vector.load %arg15[%c0_47, %c0_48] : memref<8x32xf32, #tpu.memory_space<vmem>>, vector<8x32xf32>
      tpu.vector_store %arg15[%c0_47, %c0_48], %62 {strides = array<i32>} : memref<8x32xf32, #tpu.memory_space<vmem>>, vector<8x32xf32>,
    } else {
    }
    %c0_41 = arith.constant 0 : index
    %c0_42 = arith.constant 0 : index
    %56 = vector.load %arg15[%c0_41, %c0_42] : memref<8x32xf32, #tpu.memory_space<vmem>>, vector<8x32xf32>
    %57 = arith.addf %56, %52 : vector<8x32xf32>
    %c0_43 = arith.constant 0 : index
    %c0_44 = arith.constant 0 : index
    %58 = vector.load %arg15[%c0_43, %c0_44] : memref<8x32xf32, #tpu.memory_space<vmem>>, vector<8x32xf32>
    tpu.vector_store %arg15[%c0_43, %c0_44], %57 {strides = array<i32>} : memref<8x32xf32, #tpu.memory_space<vmem>>, vector<8x32xf32>,
    %c3_i32 = arith.constant 3 : i32
    %59 = arith.cmpi eq, %arg1, %c3_i32 : i32
    %60 = arith.extui %59 : i1 to i32
    %c0_i32_45 = arith.constant 0 : i32
    %61 = arith.cmpi ne, %60, %c0_i32_45 : i32
    scf.if %61 {
      %c0_46 = arith.constant 0 : index
      %c0_47 = arith.constant 0 : index
      %62 = vector.load %arg15[%c0_46, %c0_47] : memref<8x32xf32, #tpu.memory_space<vmem>>, vector<8x32xf32>
      %c0_48 = arith.constant 0 : index
      %c0_49 = arith.constant 0 : index
      %63 = vector.load %arg12[%c0_48, %c0_49] : memref<1x32xf32, #tpu.memory_space<vmem>>, vector<1x32xf32>
      %64 = vector.broadcast %63 : vector<1x32xf32> to vector<8x32xf32>
      %65 = arith.addf %62, %64 : vector<8x32xf32>
      %c0_50 = arith.constant 0 : index
      %c0_51 = arith.constant 0 : index
      %c0_52 = arith.constant 0 : index
      %66 = vector.load %arg13[%c0_50, %c0_51, %c0_52] : memref<1x8x32xf32, #tpu.memory_space<vmem>>, vector<1x8x32xf32>
      %67 = vector.shape_cast %66 : vector<1x8x32xf32> to vector<8x32xf32>
      %68 = vector.shape_cast %65 : vector<8x32xf32> to vector<1x8x32xf32>
      tpu.vector_store %arg13[%c0_50, %c0_51, %c0_52], %68 {strides = array<i32>} : memref<1x8x32xf32, #tpu.memory_space<vmem>>, vector<1x8x32xf32>,
    } else {
    }
    return
  }
  func.func @transform_0(%arg0: i32, %arg1: i32) -> (i32, i32, i32) {
    %c0_i32 = arith.constant 0 : i32
    %c0_i32_0 = arith.constant 0 : i32
    %c0_i32_1 = arith.constant 0 : i32
    return %arg0, %c0_i32, %c0_i32_0 : i32, i32, i32
  }
  func.func @transform_1(%arg0: i32, %arg1: i32) -> (i32, i32, i32) {
    %c0_i32 = arith.constant 0 : i32
    %c0_i32_0 = arith.constant 0 : i32
    %c0_i32_1 = arith.constant 0 : i32
    return %arg0, %c0_i32, %c0_i32_0 : i32, i32, i32
  }
  func.func @transform_2(%arg0: i32, %arg1: i32) -> (i32, i32, i32) {
    %c0_i32 = arith.constant 0 : i32
    %c0_i32_0 = arith.constant 0 : i32
    %c0_i32_1 = arith.constant 0 : i32
    return %arg0, %c0_i32, %c0_i32_0 : i32, i32, i32
  }
  func.func @transform_3(%arg0: i32, %arg1: i32) -> (i32, i32, i32) {
    %c0_i32 = arith.constant 0 : i32
    %c0_i32_0 = arith.constant 0 : i32
    %c0_i32_1 = arith.constant 0 : i32
    return %arg1, %c0_i32, %c0_i32_0 : i32, i32, i32
  }
  func.func @transform_4(%arg0: i32, %arg1: i32) -> (i32, i32, i32) {
    %c0_i32 = arith.constant 0 : i32
    %c0_i32_0 = arith.constant 0 : i32
    %c0_i32_1 = arith.constant 0 : i32
    return %arg1, %c0_i32, %c0_i32_0 : i32, i32, i32
  }
  func.func @transform_5(%arg0: i32, %arg1: i32) -> (i32, i32, i32) {
    %c0_i32 = arith.constant 0 : i32
    %c0_i32_0 = arith.constant 0 : i32
    %c0_i32_1 = arith.constant 0 : i32
    return %arg1, %c0_i32, %c0_i32_0 : i32, i32, i32
  }
  func.func @transform_6(%arg0: i32, %arg1: i32) -> (i32, i32, i32) {
    %c0_i32 = arith.constant 0 : i32
    %c0_i32_0 = arith.constant 0 : i32
    %c0_i32_1 = arith.constant 0 : i32
    return %arg1, %c0_i32, %c0_i32_0 : i32, i32, i32
  }
  func.func @transform_7(%arg0: i32, %arg1: i32) -> (i32, i32, i32) {
    %c0_i32 = arith.constant 0 : i32
    %c0_i32_0 = arith.constant 0 : i32
    %c0_i32_1 = arith.constant 0 : i32
    return %arg1, %c0_i32, %c0_i32_0 : i32, i32, i32
  }
  func.func @transform_8(%arg0: i32, %arg1: i32) -> (i32, i32, i32) {
    %c0_i32 = arith.constant 0 : i32
    %c0_i32_0 = arith.constant 0 : i32
    %c0_i32_1 = arith.constant 0 : i32
    return %arg1, %c0_i32, %c0_i32_0 : i32, i32, i32
  }
  func.func @transform_9(%arg0: i32, %arg1: i32) -> (i32, i32, i32) {
    %c0_i32 = arith.constant 0 : i32
    %c0_i32_0 = arith.constant 0 : i32
    %c0_i32_1 = arith.constant 0 : i32
    return %arg1, %c0_i32, %c0_i32_0 : i32, i32, i32
  }
  func.func @transform_10(%arg0: i32, %arg1: i32) -> (i32, i32) {
    %c0_i32 = arith.constant 0 : i32
    %c0_i32_0 = arith.constant 0 : i32
    %c0_i32_1 = arith.constant 0 : i32
    return %c0_i32, %c0_i32_0 : i32, i32
  }
  func.func @transform_11(%arg0: i32, %arg1: i32) -> (i32, i32, i32) {
    %c0_i32 = arith.constant 0 : i32
    %c0_i32_0 = arith.constant 0 : i32
    %c0_i32_1 = arith.constant 0 : i32
    return %arg0, %c0_i32, %c0_i32_0 : i32, i32, i32
  }
  func.func @transform_12(%arg0: i32, %arg1: i32) -> (i32, i32, i32, i32) {
    %c0_i32 = arith.constant 0 : i32
    %c0_i32_0 = arith.constant 0 : i32
    %c0_i32_1 = arith.constant 0 : i32
    return %arg0, %arg1, %c0_i32, %c0_i32_0 : i32, i32, i32, i32
  }
}

</mosaic_0001>

<bundles_post_ra>
// kernel: tpu_custom_call.1
= control target key start
LH: loop header
LB: loop body
LE: loop exit
PB: predicated region body
PF: predicated region fallthrough
CT: control target
= control target key end

     0   :  { %s1708_s0 = inlined_call_operand.vmem [shape: f32[2,8,32], index: 0, kind: input, shape index: {}]   ;;  %s1709_s1 = inlined_call_operand.vmem [shape: f32[2,8,32], index: 1, kind: input, shape index: {}]   ;;  %s1710_s2 = inlined_call_operand.vmem [shape: f32[2,8,32], index: 2, kind: input, shape index: {}]   ;;  %s1711_s3 = inlined_call_operand.vmem [shape: bf16[4,32,8], index: 3, kind: input, shape index: {}]   ;;  %s1712_s4 = inlined_call_operand.vmem [shape: f32[4,1,8], index: 4, kind: input, shape index: {}]   ;;  %s1713_s5 = inlined_call_operand.vmem [shape: bf16[4,32,8], index: 5, kind: input, shape index: {}]   ;;  %s1714_s6 = inlined_call_operand.vmem [shape: f32[4,1,8], index: 6, kind: input, shape index: {}]   ;;  %s1715_s7 = inlined_call_operand.vmem [shape: bf16[4,32,8], index: 7, kind: input, shape index: {}]   ;;  %s1716_s8 = inlined_call_operand.vmem [shape: f32[4,1,8], index: 8, kind: input, shape index: {}]   ;;  %s1717_s9 = inlined_call_operand.vmem [shape: bf16[4,8,32], index: 9, kind: input, shape index: {}]   ;;  %s1718_s10 = inlined_call_operand.vmem [shape: f32[1,32], index: 10, kind: input, shape index: {}]   ;;  %s1719_s11 = inlined_call_operand.hbm [shape: f32[2,8,32], index: 11, kind: output, shape index: {0}]   ;;  %s1720_s12 = inlined_call_operand.hbm [shape: f32[2,4,8,8], index: 12, kind: output, shape index: {1}]  }
   0x1   :  { %1738 = sst [smem:[#allocation22_spill]] %s1708_s0 }
   0x2   :  { %1739 = sst [smem:[#allocation23_spill]] %s1709_s1 }
   0x3   :  { %1740 = sst [smem:[#allocation24_spill]] %s1710_s2 }
   0x4   :  { %1741 = sst [smem:[#allocation25_spill]] %s1712_s4 }
   0x5   :  { %1742 = sst [smem:[#allocation26_spill]] %s1717_s9 }
   0x6   :  { %1743 = sst [smem:[#allocation27_spill]] %s1718_s10 }
   0x7   :  { %1744 = sst [smem:[#allocation28_spill]] %s1719_s11 }
   0x8   :  { %1745 = sst [smem:[#allocation29_spill]] %s1720_s12 }
   0x9   :  { %18 = vsyncpa [#allocation4], 0 }
   0xa   :  { %20 = vsyncpa [#allocation4 + $0x1], 0 }
   0xb   :  { %21 = vsyncpa [#allocation6], 0 }
   0xc   :  { %23 = vsyncpa [#allocation6 + $0x1], 0  ;;  %s1432_s21 = smov 0   ;;  %s1434_s22 = smov 0  }
   0xd   :  { %s1436_s23 = smov 0   ;;  %s1438_s24 = smov 0  }
   0xe   :  { %s1440_s25 = smov 0   ;;  %s1442_s26 = smov 0  }
   0xf   :  { %s1444_s27 = smov 0   ;;  %s1446_s28 = smov 0  }
  0x10   :  { %s1448_s29 = smov 0   ;;  %s1450_s30 = smov 0  }
  0x11   :  { %s1452_s13 = smov 0  }
  0x12 LB: > { %1746 = sst [smem:[#allocation9_spill]] %s1324_s21  ;;  %s1040_s14 = sadd.s32 4294967295, %s1364_s13   ;;  %s1364_s13 = sphi %s1452_s13, %s29_s13   ;;  %s1360_s30 = sphi %s1450_s30, %s1789_s30   ;;  %s1356_s29 = sphi %s1448_s29, %s1788_s29   ;;  %s1352_s28 = sphi %s1446_s28, %s1787_s28   ;;  %s1348_s27 = sphi %s1444_s27, %s1786_s27   ;;  %s1344_s26 = sphi %s1442_s26, %s1794_s26   ;;  %s1340_s25 = sphi %s1440_s25, %s1793_s25   ;;  %s1336_s24 = sphi %s1438_s24, %s1792_s24   ;;  %s1332_s23 = sphi %s1436_s23, %s1783_s23   ;;  %s1328_s22 = sphi %s1434_s22, %s1791_s22   ;;  %s1324_s21 = sphi %s1432_s21, %s1790_s21  }
  0x13   : > { %1747 = sst [smem:[#allocation10_spill]] %s1332_s23  ;;  %s1041_s15 = sadd.s32 4294967294, %s1364_s13  }
  0x14   : > { %1748 = sst [smem:[#allocation11_spill]] %s1336_s24  ;;  %s38_s16 = sadd.s32 1, %s1356_s29 }
  0x15   : > { %1749 = sst [smem:[#allocation12_spill]] %s1344_s26  ;;  %s41_s17 = sadd.s32 1, %s1360_s30 }
  0x16   : > { %1750 = sst [smem:[#allocation13_spill]] %s1356_s29  ;;  %p39_p0 = scmp.ge.s32.totalorder %s38_s16, 4 }
  0x17   : > { %1751 = sst [smem:[#allocation14_spill]] %s1360_s30  ;;  %s329_s18 = sadd.s32 1, %s1344_s26 }
  0x18   : > { %p339_p1 = scmp.ne.s32.totalorder %s1344_s26, %s1340_s25  ;;  %p1494_p2 = scmp.eq.s32.totalorder %s1040_s14, 7 }
  0x19   : > { %s1796_s16 = smov (%p39_p0, %s38_s16), 0  ;;  %s1798_s17 = smov (!%p39_p0, %s41_s17), %s1360_s30 }
  0x1a   : > { %1753 = sst [smem:[#allocation15_spill]] %s1796_s16  ;;  %p1503_p3 = por %p1494_p2, %p339_p1 }
  0x1b   : > { %p345_p4 = scmp.ne.s32.totalorder %s1340_s25, %s1336_s24  ;;  %p43_p5 = scmp.ge.s32.totalorder %s1798_s17, 2 }
  0x1c   : > { %s1754_s20 = scalar_select %p1503_p3, 1, 0 }
  0x1d   : > { %p1509_p6 = scmp.eq.s32.totalorder %s1041_s15, 7  ;;  %s353_s12 = ssub.s32 %s1356_s29, %s1796_s16 }
  0x1e   : > { %1755 = sst [smem:[#allocation16_spill]] %s1754_s20  ;;  %s357_s11 = sadd.s32 1, %s1332_s23 }
  0x1f   : > { %s1800_s17 = smov (%p43_p5, %s1798_s17), 0  ;;  %p1520_p7 = por %p1509_p6, %p345_p4 }
  0x20   : > { %1757 = sst [smem:[#allocation17_spill]] %s1800_s17  ;;  %p367_p8 = scmp.ne.s32.totalorder %s1332_s23, %s1328_s22 }
  0x21   : > { %s1758_s10 = scalar_select %p1520_p7, 1, 0 }
  0x22   : > { %s326_s24 = ssub.s32 %s1360_s30, %s1800_s17  ;;  %p373_p9 = scmp.ne.s32.totalorder %s1328_s22, %s1324_s21 }
  0x23   : > { %1759 = sst [smem:[#allocation18_spill]] %s1758_s10  ;;  %p327_p10 = scmp.eq.s32.totalorder %s326_s24, 0 }
  0x24   : > { %s354_s15 = sor.u32 %s353_s12, %s326_s24  ;;  %p1532_p12 = por %p367_p8, %p1494_p2 }
  0x25   : > { %p355_p11 = scmp.eq.s32.totalorder %s354_s15, 0  ;;  %p1544_p13 = por %p373_p9, %p1509_p6 }
  0x26   : > { %s1537_s16 = scalar_select %p327_p10, %s1344_s26, %s329_s18  }
  0x27   : > { %s1540_s29 = scalar_select %p355_p11, %s1332_s23, %s357_s11  }
  0x28   : > { %1761 = sst [smem:[#allocation19_spill]] %s1537_s16  ;;  %p1044_p0 = scmp.ge.s32.totalorder %s1364_s13, 1 }
  0x29   : > { %1762 = sst [smem:[#allocation20_spill]] %s1540_s29  ;;  %p465_p1 = scmp.lt.s32.totalorder %s1364_s13, 9 }
  0x2a   : > { %s1763_s9 = scalar_select %p1544_p13, 1, 0 }
  0x2b   : > { %p466_p4 = pnand %p1044_p0, %p465_p1 }
  0x2c   : > { %1764 = sst [smem:[#allocation21_spill]] %s1763_s9  ;;  %s1730_s12 = sand.u32 (!%p466_p4), 1, %s1340_s25  }
  0x2d   : > { %469 = sbr.rel (%p466_p4) target bundleno = 915 (0x393), region = 64  ;;  %p559_p2 = scmp.lt.s32.totalorder (!%p466_p4), %s1348_s27, 3 }
  0x2e   : > { %s1554_s11 = sshll.u32 (!%p466_p4), %s1730_s12, 3  ;;  %p547_p5 = scmp.lt.s32.totalorder (!%p466_p4), %s1352_s28, 1 }
  0x2f   : > { %s1765_s4 = sld [smem:[#allocation25_spill]] (!%p466_p4)  ;;  %p1087_p6 = scmp.ne.s32.totalorder (!%p466_p4), %s1348_s27, 0 }
  0x30   : > { %s1766_s0 = sld [smem:[#allocation22_spill]] (!%p466_p4) }
  0x31   : > { %s1767_s1 = sld [smem:[#allocation23_spill]] (!%p466_p4) }
  0x32   : > { %s1558_s24 = scalar_select %p559_p2, %s1348_s27, 3  ;;  %vm623_vm0 = vcmask 261120   ;;  %vm706_vm1 = vcmask 64512   ;;  %vm743_vm2 = vcmask 1043456  }
  0x33   : > { %s548_s18 = scalar_select %p547_p5, %s1352_s28, 1 }
  0x34   : > { %s1562_s19 = sshll.u32 %s1558_s24, 4  ;;  %s574_s16 = scalar_lea.vmem %s1714_s6, %s1558_s24 }
  0x35   : > { %s566_s17 = scalar_lea.vmem %s1765_s4, %s1558_s24  ;;  %s563_s12 = scalar_lea.vmem %s1711_s3, %s1562_s19  ;;  %v1207_v8 = vld [vmem:[%s574_s16] ss:$0 sm:$0xff] }
  0x36   : > { %s571_s23 = scalar_lea.vmem %s1713_s5, %s1562_s19  ;;  %v1100_v0 = vld [vmem:[%s563_s12 + $0x8] sm:$0xff]  ;;  %s1576_s9 = sshll.u32 %s548_s18, 3  ;;  %v1099_v2 = vld [vmem:[%s563_s12] sm:$0xff] }
  0x37   : > { %v1102_v1 = vld [vmem:[%s571_s23 + $0x8] sm:$0xff]  ;;  %s550_s15 = scalar_lea.vmem %s1766_s0, %s1576_s9  ;;  %s554_s30 = scalar_lea.vmem %s1767_s1, %s1576_s9  ;;  %633 = vmatpush.bf16.msra.mxu0 %v1100_v0  ;;  %v1101_v3 = vld [vmem:[%s571_s23] sm:$0xff] }
  0x38   : > { %665 = vmatpush.bf16.msra.mxu1 %v1102_v1  ;;  %v588_v4 = vld [vmem:[%s550_s15] sm:$0xff]  ;;  %s579_s21 = scalar_lea.vmem %s1715_s7, %s1562_s19  ;;  %s1768_s2 = sld [smem:[#allocation24_spill]] }
  0x39   : > { %v590_v5 = vld [vmem:[%s554_s30] sm:$0xff]  ;;  %v589_v6 = vpack.c.bf16 %v588_v4, %v588_v4  ;;  %v1104_v19 = vld [vmem:[%s579_s21 + $0x8] sm:$0xff]  ;;  %s582_s19 = scalar_lea.vmem %s1716_s8, %s1558_s24  ;;  %s1769_s26 = sld [smem:[#allocation26_spill]] }
  0x3a   : > { %v591_v7 = vpack.c.bf16 %v590_v5, %v590_v5  ;;  %v1206_v11 = vld [vmem:[%s566_s17] ss:$0 sm:$0xff]  ;;  %697 = vmatpush.bf16.msra.mxu2 %v1104_v19  ;;  %s1736_s16 = sand.u32 1, %s1328_s22  }
  0x3b   : > { %634 = vmatpush.bf16.msra.mxu0 %v1099_v2  ;;  %v1103_v20 = vld [vmem:[%s579_s21] sm:$0xff]  ;;  %s1616_s4 = sshll.u32 %s1736_s16, 3 }
  0x3c   : > { %666 = vmatpush.bf16.msra.mxu1 %v1101_v3  ;;  %v1208_v26 = vld [vmem:[%s582_s19] ss:$0 sm:$0xff]  ;;  %s1737_s10 = scalar_lea.vmem [#allocation5], %s1616_s4 }
  0x3e   : > { %1065 = vmatmul.msk.bf16.vlgmr.msra.gmra.mxu0 %vm623_vm0, %v589_v6  ;;  %s558_s17 = scalar_lea.vmem %s1768_s2, %s1576_s9  ;;  %698 = vmatpush.bf16.msra.mxu2 %v1103_v20  ;;  %s1056_s9 = sshll.u32 %s1558_s24, 2 }
  0x3f   : > { %1074 = vmatmul.msk.bf16.vlgmr.msra.gmra.mxu1 %vm623_vm0, %v591_v7  ;;  %v592_v21 = vld [vmem:[%s558_s17] sm:$0xff]  ;;  %s586_s29 = scalar_lea.vmem %s1769_s26, %s1056_s9  ;;  %s539_s24 = scalar_lea.vmem [#allocation3], %s1554_s11 }
  0x40   : > { %v593_v22 = vpack.c.bf16 %v592_v21, %v592_v21  ;;  %v606_v37 = vld [vmem:[%s586_s29] sm:$0xf] }
  0x41   : > { %v765_v38 = vsel %vm743_vm2, %v606_v37, 0 }
  0x42   : > { %1083 = vmatmul.msk.bf16.vlgmr.msra.gmra.mxu2 %vm623_vm0, %v593_v22  ;;  %774 = vmatpush.bf16.msrb.mxu1 %v765_v38 }
  0xbb   : > { %v636_v9 = vpop.f32.mrf.mxu0 }
  0xbc   : > { %v668_v10 = vpop.f32.mrf.mxu1  ;;  %v637_v14 = vadd.f32 %v1206_v11, %v636_v9 }
  0xbd   : > { %v669_v12 = vadd.f32 %v1207_v8, %v668_v10 }
  0xbe   : > { %v704_v18 = vpack.c.bf16 %v637_v14, %v637_v14 }
  0xbf   : > { %v705_v13 = vpack.c.bf16 %v669_v12, %v669_v12 }
  0xc1   : > { %v711_v15 = vsel %vm706_vm1, %v705_v13, 0 }
  0xc2   : > { %720 = vmatpush.bf16.xpose.msra.mxu3 %v711_v15 }
  0xc3   : > { %v638_v16 = vpop.f32.mrf.mxu0 }
  0xc4   : > { %v670_v17 = vpop.f32.mrf.mxu1 }
  0xc5   : > { %v700_v27 = vpop.f32.mrf.mxu2 }
  0xc6   : > { %v701_v29 = vadd.f32 %v1208_v26, %v700_v27 }
  0xc8   : > { %v739_v31 = vpack.c.bf16 %v701_v29, %v701_v29 }
  0xc9   : > { %1084 = vmatmul.msk.bf16.vlgmr.msra.gmra.mxu3 %vm706_vm1, %v704_v18 }
  0xca   : > { %v745_v33 = vsel %vm743_vm2, %v739_v31, 0 }
  0xcb   : > { %754 = vmatpush.bf16.msrb.mxu0 %v745_v33 }
  0xcd   : > { %v702_v34 = vpop.f32.mrf.mxu2 }
 0x14c   : > { %v722_v23 = vpop.f32.mrf.mxu3 }
 0x14d   : > { %v726_v24 = vsel %vm706_vm1, %v722_v23, -inf }
 0x14e   : > { %727 = vmax.xlane.f32.xlu0 %v726_v24 }
 0x154   : > { %v724_v25 = vpop.f32.mrf.mxu3 }
 0x1c1   : > { %v728_v28 = vpop.xlane.xlu0 %727 }
 0x1c2   : > { %v729_v30 = vsub.f32 %v722_v23, %v728_v28 }
 0x1c4   : > { %v730_v32 = vmul.f32 1.442695, %v729_v30 }
 0x1c6   : > { %1209 = vpow2.f32 %v730_v32 }
 0x1cc   : > { %v1210_v35 = vpop.eup %1209 }
 0x1cd   : > { %v732_v36 = vsel %vm706_vm1, %v1210_v35, 0.0 }
 0x1ce   : > { %733 = vadd.xlane.f32.xlu0 %v732_v36 }
 0x241   : > { %v734_v39 = vpop.xlane.xlu0 %733 }
 0x242   : > { %1211 = vrcp.f32 %v734_v39 }
 0x248   : > { %v1212_v40 = vpop.eup %1211 }
 0x249   : > { %v736_v41 = vmul.f32 %v1212_v40, %v1210_v35 }
 0x24b   : > { %737 = vst.msk [vmem:[%s1737_s10] sm:$0xff] %vm706_vm1, %v736_v41  ;;  %v738_v42 = vpack.c.bf16 %v736_v41, %v736_v41 }
 0x24d   : > { %1085 = vmatmul.msk.bf16.vlgmr.msrb.gmra.mxu0 %vm706_vm1, %v738_v42 }
 0x2ca   : > { %v756_v43 = vpop.f32.mrf.mxu0 }
 0x2cb   : > { %v760_v44 = vpack.c.bf16 %v756_v43, %v756_v43 }
 0x2cd   : > { %1086 = vmatmul.msk.bf16.vlgmr.msrb.gmra.mxu1 %vm706_vm1, %v760_v44 }
 0x2d2   : > { %v758_v45 = vpop.f32.mrf.mxu0 }
 0x34a   : > { %v776_v46 = vpop.f32.mrf.mxu1 }
 0x34e   : > { %783 = sbr.rel (%p1087_p6) target bundleno = 853 (0x355), region = 68 }
 0x352   : > { %v778_v47 = vpop.f32.mrf.mxu1 }
 0x353   : > { %v1366_v48 = vmov 0.0  }
 0x354   : > { %784 = vst.msk [vmem:[#allocation2] sm:$0xff] %vm623_vm0, %v1366_v48 }
 0x355 PF: > { %p1088_p8 = scmp.ne.s32.totalorder %s1348_s27, 3 }
 0x356   : > { %s1770_s12 = sld [smem:[#allocation27_spill]] (!%p1088_p8) }
 0x35a   : > { %791 = sbr.rel (%p1088_p8) target bundleno = 873 (0x369), region = 72 }
 0x35b   : > { %v785_v49 = vld [vmem:[#allocation2] sm:$0xff] }
 0x35c   : > { %v786_v50 = vadd.f32 %v785_v49, %v776_v46 }
 0x35e   : > { %787 = vst.msk [vmem:[#allocation2] sm:$0xff] %vm623_vm0, %v786_v50 }
 0x35f   : > { %v1213_v52 = vld [vmem:[%s1770_s12] ss:$0 sm:$0xff] }
 0x365   : > { %v792_v51 = vld [vmem:[#allocation2] sm:$0xff] }
 0x366   : > { %v797_v53 = vadd.f32 %v1213_v52, %v792_v51 }
 0x368   : > { %798 = vst.msk [vmem:[%s539_s24] sm:$0xff] %vm623_vm0, %v797_v53 }
 0x369 PF: > { %s1091_s17 = sshll.u32 %s1352_s28, 3  ;;  %s1772_s19 = sld [smem:[#allocation28_spill]] }
 0x36a   : > { %s817_s15 = sshll.u32 %s539_s24, 4  ;;  %s1773_s26 = sand.u32 1, %s1340_s25   ;;  %s818_s15 = int_to_ptr.vmem [resolvable:$true] %s817_s15 }
 0x36b   : > { %s800_s29 = scalar_lea.sflag [#allocation4], %s1773_s26 }
 0x36f   : > { %s815_s9 = scalar_lea.hbm %s1772_s19, %s1091_s17  ;;  %s1234_s10 = scalar_lea.hbm %s1772_s19, 16 }
 0x370   : > { %s819_s30 = sshll.u32 %s815_s9, 4  ;;  %s820_s30 = int_to_ptr.hbm [resolvable:$true] %s819_s30 }
 0x371   : > { %s1228_s21 = sshra.s32 %s820_s30, 4  ;;  %s1229_s21 = int_to_ptr.hbm [resolvable:$true] %s1228_s21 }
 0x372   : > { %s1230_s23 = scalar_lea.hbm %s1229_s21, 8  ;;  %p1235_p0 = scmp.lt.s32.totalorder %s1229_s21, %s1772_s19 }
 0x373   : > { %p1231_p9 = scmp.ne.s32.totalorder %s1229_s21, %s1230_s23  ;;  %p1236_p1 = scmp.lt.s32.totalorder %s1234_s10, %s1230_s23 }
 0x375   : > { %p1232_p10 = pnand %p1231_p9, %p1503_p3  ;;  %p1237_p4 = por %p1236_p1, %p1235_p0 }
 0x377   : > { %p1233_p11 = pneg %p1232_p10 }
 0x379   : > { %p1238_p2 = pnand %p1237_p4, %p1233_p11 }
 0x37b   : > { %1241 = shalt.err (!%p1238_p2)
}
 0x37c   : > { %1105 = dma.vmem_to_hbm [thread:$0]  (%p1503_p3), %s818_s15, 128, %s820_s30, %s800_s29  }
 0x37d   : > { %s1092_s24 = sshll.u32 %s1352_s28, 2  ;;  %s1774_s17 = scalar_lea.vmem [#allocation5], %s1616_s4 }
 0x37e   : > { %s833_s16 = sshll.u32 %s1774_s17, 4  ;;  %s829_s14 = sadd.s32 %s1348_s27, %s1092_s24  ;;  %s834_s16 = int_to_ptr.vmem [resolvable:$true] %s833_s16 }
 0x37f   : > { %s1093_s9 = sshll.u32 %s829_s14, 3  ;;  %s1775_s21 = sld [smem:[#allocation29_spill]] }
 0x380   : > { %s1777_s18 = sand.u32 1, %s1328_s22  }
 0x381   : > { %s805_s11 = scalar_lea.sflag [#allocation6], %s1777_s18 }
 0x385   : > { %s1776_s12 = smov %s1775_s21  ;;  %s831_s10 = scalar_lea.hbm %s1775_s21, %s1093_s9 }
 0x386   : > { %s835_s23 = sshll.u32 %s831_s10, 4  ;;  %s1262_s27 = scalar_lea.hbm %s1776_s12, 64  ;;  %s836_s23 = int_to_ptr.hbm [resolvable:$true] %s835_s23 }
 0x387   : > { %s1256_s1 = sshra.s32 %s836_s23, 4  ;;  %s1257_s1 = int_to_ptr.hbm [resolvable:$true] %s1256_s1 }
 0x388   : > { %s1258_s2 = scalar_lea.hbm %s1257_s1, 8  ;;  %p1263_p8 = scmp.lt.s32.totalorder %s1257_s1, %s1776_s12 }
 0x389   : > { %p1259_p5 = scmp.ne.s32.totalorder %s1257_s1, %s1258_s2  ;;  %p1264_p9 = scmp.lt.s32.totalorder %s1262_s27, %s1258_s2 }
 0x38b   : > { %p1260_p3 = pnand %p1259_p5, %p1532_p12  ;;  %p1265_p10 = por %p1264_p9, %p1263_p8 }
 0x38d   : > { %p1261_p6 = pneg %p1260_p3 }
 0x38f   : > { %p1266_p11 = pnand %p1265_p10, %p1261_p6 }
 0x391   : > { %1269 = shalt.err (!%p1266_p11)
}
 0x392   : > { %1106 = dma.vmem_to_hbm [thread:$0]  (%p1532_p12), %s834_s16, 128, %s836_s23, %s805_s11  }
 0x393 PF: > { %s1778_s29 = sld [smem:[#allocation11_spill]]  ;;  %p1116_p0 = scmp.ge.s32.totalorder %s1364_s13, 2 }
 0x395   : > { %p1110_p1 = pnand %p1116_p0, %p1520_p7 }
 0x397   : > { %p1111_p4 = pneg %p1110_p1 }
 0x399   : > { %s847_s17 = sand.u32 1, %s1778_s29  }
 0x39a   : > { %s848_s14 = scalar_lea.sflag [#allocation4], %s847_s17 }
 0x39b   : > { %1315 = dma.done.wait (%p1111_p4), %s848_s14, 128  }
 0x39c   : > { %1317 = vsyncadd (%p1111_p4), %s848_s14, 4294967168  ;;  %s1780_s1 = sld [smem:[#allocation9_spill]]  ;;  %p1113_p2 = pnand %p1116_p0, %p1544_p13 }
 0x39e   : > { %p1114_p5 = pneg %p1113_p2 }
 0x3a2   : > { %s857_s9 = sand.u32 1, %s1780_s1  }
 0x3a3   : > { %s858_s20 = scalar_lea.sflag [#allocation6], %s857_s9 }
 0x3a4   : > { %1319 = dma.done.wait (%p1114_p5), %s858_s20, 128  }
 0x3a5   : > { %1321 = vsyncadd (%p1114_p5), %s858_s20, 4294967168  ;;  %s29_s13 = sadd.s32 1, %s1364_s13   ;;  %s1782_s16 = sld [smem:[#allocation10_spill]] }
 0x3a6   : > { %p26_p12 = scmp.ge.s32.totalorder %s29_s13, 10   ;;  %s1783_s23 = sld [smem:[#allocation20_spill]] }
 0x3a7   : > { %s1784_s26 = sld [smem:[#allocation12_spill]]  ;;  %s1790_s21 = smov %s1328_s22 }
 0x3a8   : > { %s1785_s0 = sld [smem:[#allocation19_spill]]  ;;  %s1792_s24 = smov %s1340_s25 }
 0x3a9   : > { %s1786_s27 = sld [smem:[#allocation13_spill]] }
 0x3aa   : > { %s1787_s28 = sld [smem:[#allocation14_spill]]  ;;  %28 = sbr.rel (!%p26_p12) target bundleno = 18 (0x12), region = 151 }
 0x3ab   : > { %s1788_s29 = sld [smem:[#allocation15_spill]]  ;;  %s1791_s22 = smov %s1782_s16 }
 0x3ac   : > { %s1789_s30 = sld [smem:[#allocation17_spill]] }
 0x3ad   : > { %s1793_s25 = smov %s1784_s26 }
 0x3ae   : > { %s1794_s26 = smov %s1785_s0 }
 0x3af   :  { %864 = vsyncpa [#allocation4], 1 }
 0x3b0   :  { %866 = vsyncpa [#allocation4 + $0x1], 1 }
 0x3b1   :  { %867 = vsyncpa [#allocation6], 1 }
 0x3b2   :  { %869 = vsyncpa [#allocation6 + $0x1], 1 }

</bundles_post_ra>
